<compile_context>
chip_gen: v7x
topology: tpu7x:2x2x1
jax: 0.10.0
libtpu: 0.0.40
codegen_flags: <defaults>
</compile_context>

<pallas_src>
import functools

import jax
import jax.numpy as jnp
import numpy as np
from jax.experimental import pallas as pl
from jax.experimental.pallas import tpu as pltpu

LANES = 128
SUBLANES = 8
MAX_BLOCK_ROWS = 2048  # (2048, 128) f32 tile = 1 MiB; 2 inputs x 2 buffers = 4 MiB


def _cdiv(a, b):
    return -(-a // b)


def _focal_sums_kernel(pred_ref, gt_ref, out_ref, acc_ref, *,
                       block_rows, inner, rows, need_mask):
    i = pl.program_id(1)

    @pl.when(i == 0)
    def _init():
        acc_ref[...] = jnp.zeros_like(acc_ref)

    pred = pred_ref[...].astype(jnp.float32)
    gt = gt_ref[...].astype(jnp.float32)

    if need_mask:
        # Mask rows beyond the real array (partial / overhang blocks).
        c = pl.program_id(0)
        row0 = (c * inner + i) * block_rows
        row_idx = row0 + jax.lax.broadcasted_iota(
            jnp.int32, (block_rows, LANES), 0)
        valid = row_idx < rows
        # Neutral values: pred=0.5 keeps logs finite, gt=2.0 zeroes both masks.
        pred = jnp.where(valid, pred, 0.5)
        gt = jnp.where(valid, gt, 2.0)

    pos_inds = (gt == 1.0).astype(jnp.float32)
    neg_inds = (gt < 1.0).astype(jnp.float32)
    neg_weights = jnp.square(jnp.square(1.0 - gt))              # (1 - gt)^4

    pos_loss = jnp.log(pred) * jnp.square(1.0 - pred) * pos_inds
    neg_loss = jnp.log(1.0 - pred) * jnp.square(pred) * (neg_weights * neg_inds)

    # Fold (block_rows, 128) -> (8, 128) with pure VPU vreg adds, then
    # accumulate into the VMEM scratch (no per-step scalar / SMEM round-trip).
    def fold(x):
        return jnp.sum(x.reshape(block_rows // SUBLANES, SUBLANES, LANES),
                       axis=0)

    acc_ref[0] += fold(pos_loss)
    acc_ref[1] += fold(neg_loss)
    acc_ref[2] += fold(pos_inds)

    @pl.when(i == pl.num_programs(1) - 1)
    def _finalize():
        # Single cross-sublane reduce per core: (3, 8, 128) -> (3, 128).
        out_ref[...] = jnp.sum(acc_ref[...], axis=1).reshape(1, 3, LANES)


def focal_loss(pred, gt, *, max_block_rows=MAX_BLOCK_ROWS):
    """CornerNet focal loss for pred, gt of shape (B, C, H, W)."""
    assert pred.shape == gt.shape
    n = int(np.prod(pred.shape))

    # Keep native dtype (no wrapper-side f32 cast); flatten is free.
    pred_flat = jnp.ravel(pred)
    gt_flat = jnp.ravel(gt)

    chunk = SUBLANES * LANES                       # 1024
    n_pad = _cdiv(n, chunk) * chunk
    if n_pad != n:
        # Minimal neutral-value tail pad (contributes zero to all sums).
        pred_flat = jnp.pad(pred_flat, (0, n_pad - n), constant_values=0.5)
        gt_flat = jnp.pad(gt_flat, (0, n_pad - n), constant_values=2.0)

    rows = n_pad // LANES                          # multiple of 8
    pred2d = pred_flat.reshape(rows, LANES)
    gt2d = gt_flat.reshape(rows, LANES)

    block_rows = min(max_block_rows, rows)         # both multiples of 8
    row_blocks = _cdiv(rows, block_rows)
    n_cores = 2 if row_blocks >= 2 else 1          # megacore split (v7x)
    inner = _cdiv(row_blocks, n_cores)
    need_mask = (n_cores * inner * block_rows) > rows

    if n_cores * inner == row_blocks:
        def in_map(c, i):
            return (c * inner + i, 0)
    else:
        # Clamp so the (fully masked) overhang step re-reads the last block
        # instead of issuing an out-of-bounds DMA.
        def in_map(c, i):
            return (jnp.minimum(c * inner + i, row_blocks - 1), 0)

    kernel = functools.partial(
        _focal_sums_kernel, block_rows=block_rows, inner=inner,
        rows=rows, need_mask=need_mask)

    partials = pl.pallas_call(
        kernel,
        out_shape=jax.ShapeDtypeStruct((n_cores, 3, LANES), jnp.float32),
        grid_spec=pltpu.PrefetchScalarGridSpec(
            num_scalar_prefetch=0,
            grid=(n_cores, inner),
            in_specs=[
                pl.BlockSpec((block_rows, LANES), in_map),
                pl.BlockSpec((block_rows, LANES), in_map),
            ],
            out_specs=pl.BlockSpec((1, 3, LANES), lambda c, i: (c, 0, 0)),
            scratch_shapes=[pltpu.VMEM((3, SUBLANES, LANES), jnp.float32)],
        ),
        compiler_params=pltpu.CompilerParams(
            dimension_semantics=("parallel", "arbitrary"),
            vmem_limit_bytes=32 * 1024 * 1024,
        ),
    )(pred2d, gt2d)

    sums = jnp.sum(partials, axis=(0, 2))          # (3,) tiny JAX-side reduce
    pos_loss_sum, neg_loss_sum, num_pos = sums[0], sums[1], sums[2]
    return jnp.where(
        num_pos == 0,
        -neg_loss_sum,
        -(pos_loss_sum + neg_loss_sum) / jnp.maximum(num_pos, 1.0),
    )


def _focal_loss_ref(pred, gt):
    """Pure-JAX reference mirroring the PyTorch _neg_loss."""
    pred = pred.astype(jnp.float32)
    gt = gt.astype(jnp.float32)
    pos_inds = (gt == 1.0).astype(jnp.float32)
    neg_inds = (gt < 1.0).astype(jnp.float32)
    neg_weights = (1.0 - gt) ** 4
    pos_loss = jnp.log(pred) * (1.0 - pred) ** 2 * pos_inds
    neg_loss = jnp.log(1.0 - pred) * pred ** 2 * neg_weights * neg_inds
    num_pos = pos_inds.sum()
    pos_loss = pos_loss.sum()
    neg_loss = neg_loss.sum()
    return jnp.where(num_pos == 0, -neg_loss,
                     -(pos_loss + neg_loss) / jnp.maximum(num_pos, 1.0))


if __name__ == "__main__":
    key = jax.random.PRNGKey(0)

    def make_inputs(k, shape, peak_prob=0.02):
        k_pred, k_gt, k_peak = jax.random.split(k, 3)
        # Predictions in (0, 1) as if post-sigmoid.
        p = jax.random.uniform(k_pred, shape, jnp.float32,
                               minval=0.01, maxval=0.99)
        g_soft = jax.random.uniform(k_gt, shape, jnp.float32,
                                    minval=0.0, maxval=0.95)
        peaks = jax.random.bernoulli(k_peak, peak_prob, shape)
        g = jnp.where(peaks, 1.0, g_soft)
        return p, g

    k1, k2, k3 = jax.random.split(key, 3)

    # 1) Spec-sized case: batch=2, channels=4, spatial=16x16.
    pred, gt = make_inputs(k1, (2, 4, 16, 16))
    out = jax.block_until_ready(focal_loss(pred, gt))
    ref = jax.block_until_ready(_focal_loss_ref(pred, gt))
    np.testing.assert_allclose(np.asarray(out), np.asarray(ref),
                               rtol=1e-5, atol=1e-5)

    # 2) Odd size (exercises neutral tail pad) and num_pos == 0 branch.
    pred, gt = make_inputs(k2, (2, 3, 17, 19), peak_prob=0.0)
    out = jax.block_until_ready(focal_loss(pred, gt))
    ref = jax.block_until_ready(_focal_loss_ref(pred, gt))
    np.testing.assert_allclose(np.asarray(out), np.asarray(ref),
                               rtol=1e-5, atol=1e-5)

    # 3) Multi-block case (big tiles, 2-core split, in-kernel row masking).
    pred, gt = make_inputs(k3, (4, 8, 128, 132))
    out = jax.block_until_ready(focal_loss(pred, gt))
    ref = jax.block_until_ready(_focal_loss_ref(pred, gt))
    np.testing.assert_allclose(np.asarray(out), np.asarray(ref),
                               rtol=1e-4, atol=1e-4)

    print("KERNEL_OK")
</pallas_src>

<mosaic_0001>
module attributes {stable_mosaic.version = 11 : i64} {
  func.func @_focal_sums_kernel(%arg0: i32, %arg1: i32, %arg2: memref<16x128xf32, #tpu.memory_space<vmem>>, %arg3: memref<16x128xf32, #tpu.memory_space<vmem>>, %arg4: memref<1x3x128xf32, #tpu.memory_space<vmem>>, %arg5: memref<3x8x128xf32, #tpu.memory_space<vmem>>) attributes {dimension_semantics = [#tpu.dimension_semantics<parallel>, #tpu.dimension_semantics<arbitrary>], iteration_bounds = array<i64: 1, 1>, scalar_prefetch = 0 : i64, scratch_operands = 1 : i64, tpu.core_type = #tpu.core_type<tc>, window_params = [{transform_indices = @transform_0, window_bounds = array<i64: 16, 128>}, {transform_indices = @transform_1, window_bounds = array<i64: 16, 128>}, {transform_indices = @transform_2, window_bounds = array<i64: 1, 3, 128>}]} {
    %c0_i32 = arith.constant 0 : i32
    %0 = arith.cmpi eq, %arg1, %c0_i32 : i32
    %1 = arith.extui %0 : i1 to i32
    %c0_i32_0 = arith.constant 0 : i32
    %2 = arith.cmpi ne, %1, %c0_i32_0 : i32
    scf.if %2 {
      %cst_29 = arith.constant 0.000000e+00 : f32
      %57 = vector.broadcast %cst_29 : f32 to vector<3x8x128xf32>
      %c0_30 = arith.constant 0 : index
      %c0_31 = arith.constant 0 : index
      %c0_32 = arith.constant 0 : index
      %58 = vector.load %arg5[%c0_30, %c0_31, %c0_32] : memref<3x8x128xf32, #tpu.memory_space<vmem>>, vector<3x8x128xf32>
      tpu.vector_store %arg5[%c0_30, %c0_31, %c0_32], %57 {strides = array<i32>} : memref<3x8x128xf32, #tpu.memory_space<vmem>>, vector<3x8x128xf32>,
    } else {
    }
    %c0 = arith.constant 0 : index
    %c0_1 = arith.constant 0 : index
    %3 = vector.load %arg2[%c0, %c0_1] : memref<16x128xf32, #tpu.memory_space<vmem>>, vector<16x128xf32>
    %c0_2 = arith.constant 0 : index
    %c0_3 = arith.constant 0 : index
    %4 = vector.load %arg3[%c0_2, %c0_3] : memref<16x128xf32, #tpu.memory_space<vmem>>, vector<16x128xf32>
    %cst = arith.constant 1.000000e+00 : f32
    %5 = vector.broadcast %cst : f32 to vector<16x128xf32>
    %6 = arith.cmpf oeq, %4, %5 : vector<16x128xf32>
    %7 = arith.extui %6 : vector<16x128xi1> to vector<16x128xi32>
    %8 = arith.sitofp %7 : vector<16x128xi32> to vector<16x128xf32>
    %cst_4 = arith.constant 1.000000e+00 : f32
    %9 = vector.broadcast %cst_4 : f32 to vector<16x128xf32>
    %10 = arith.cmpf olt, %4, %9 : vector<16x128xf32>
    %11 = arith.extui %10 : vector<16x128xi1> to vector<16x128xi32>
    %12 = arith.sitofp %11 : vector<16x128xi32> to vector<16x128xf32>
    %cst_5 = arith.constant 1.000000e+00 : f32
    %13 = vector.broadcast %cst_5 : f32 to vector<16x128xf32>
    %14 = arith.subf %13, %4 : vector<16x128xf32>
    %15 = arith.mulf %14, %14 : vector<16x128xf32>
    %16 = arith.mulf %15, %15 : vector<16x128xf32>
    %17 = math.log %3 : vector<16x128xf32>
    %cst_6 = arith.constant 1.000000e+00 : f32
    %18 = vector.broadcast %cst_6 : f32 to vector<16x128xf32>
    %19 = arith.subf %18, %3 : vector<16x128xf32>
    %20 = arith.mulf %19, %19 : vector<16x128xf32>
    %21 = arith.mulf %17, %20 : vector<16x128xf32>
    %22 = arith.mulf %21, %8 : vector<16x128xf32>
    %cst_7 = arith.constant 1.000000e+00 : f32
    %23 = vector.broadcast %cst_7 : f32 to vector<16x128xf32>
    %24 = arith.subf %23, %3 : vector<16x128xf32>
    %25 = math.log %24 : vector<16x128xf32>
    %26 = arith.mulf %3, %3 : vector<16x128xf32>
    %27 = arith.mulf %25, %26 : vector<16x128xf32>
    %28 = arith.mulf %16, %12 : vector<16x128xf32>
    %29 = arith.mulf %27, %28 : vector<16x128xf32>
    %c0_8 = arith.constant 0 : index
    %c0_9 = arith.constant 0 : index
    %c0_10 = arith.constant 0 : index
    %30 = vector.load %arg5[%c0_8, %c0_9, %c0_10] : memref<3x8x128xf32, #tpu.memory_space<vmem>>, vector<1x8x128xf32>
    %31 = vector.shape_cast %30 : vector<1x8x128xf32> to vector<8x128xf32>
    %32 = vector.shape_cast %22 : vector<16x128xf32> to vector<2x8x128xf32>
    %cst_11 = arith.constant dense<0.000000e+00> : vector<8x128xf32>
    %33 = vector.multi_reduction <add>, %32, %cst_11 [0] : vector<2x8x128xf32> to vector<8x128xf32>
    %34 = arith.addf %31, %33 : vector<8x128xf32>
    %c0_12 = arith.constant 0 : index
    %c0_13 = arith.constant 0 : index
    %c0_14 = arith.constant 0 : index
    %35 = vector.load %arg5[%c0_12, %c0_13, %c0_14] : memref<3x8x128xf32, #tpu.memory_space<vmem>>, vector<1x8x128xf32>
    %36 = vector.shape_cast %35 : vector<1x8x128xf32> to vector<8x128xf32>
    %37 = vector.shape_cast %34 : vector<8x128xf32> to vector<1x8x128xf32>
    tpu.vector_store %arg5[%c0_12, %c0_13, %c0_14], %37 {strides = array<i32>} : memref<3x8x128xf32, #tpu.memory_space<vmem>>, vector<1x8x128xf32>,
    %c1 = arith.constant 1 : index
    %c0_15 = arith.constant 0 : index
    %c0_16 = arith.constant 0 : index
    %38 = vector.load %arg5[%c1, %c0_15, %c0_16] : memref<3x8x128xf32, #tpu.memory_space<vmem>>, vector<1x8x128xf32>
    %39 = vector.shape_cast %38 : vector<1x8x128xf32> to vector<8x128xf32>
    %40 = vector.shape_cast %29 : vector<16x128xf32> to vector<2x8x128xf32>
    %cst_17 = arith.constant dense<0.000000e+00> : vector<8x128xf32>
    %41 = vector.multi_reduction <add>, %40, %cst_17 [0] : vector<2x8x128xf32> to vector<8x128xf32>
    %42 = arith.addf %39, %41 : vector<8x128xf32>
    %c1_18 = arith.constant 1 : index
    %c0_19 = arith.constant 0 : index
    %c0_20 = arith.constant 0 : index
    %43 = vector.load %arg5[%c1_18, %c0_19, %c0_20] : memref<3x8x128xf32, #tpu.memory_space<vmem>>, vector<1x8x128xf32>
    %44 = vector.shape_cast %43 : vector<1x8x128xf32> to vector<8x128xf32>
    %45 = vector.shape_cast %42 : vector<8x128xf32> to vector<1x8x128xf32>
    tpu.vector_store %arg5[%c1_18, %c0_19, %c0_20], %45 {strides = array<i32>} : memref<3x8x128xf32, #tpu.memory_space<vmem>>, vector<1x8x128xf32>,
    %c2 = arith.constant 2 : index
    %c0_21 = arith.constant 0 : index
    %c0_22 = arith.constant 0 : index
    %46 = vector.load %arg5[%c2, %c0_21, %c0_22] : memref<3x8x128xf32, #tpu.memory_space<vmem>>, vector<1x8x128xf32>
    %47 = vector.shape_cast %46 : vector<1x8x128xf32> to vector<8x128xf32>
    %48 = vector.shape_cast %8 : vector<16x128xf32> to vector<2x8x128xf32>
    %cst_23 = arith.constant dense<0.000000e+00> : vector<8x128xf32>
    %49 = vector.multi_reduction <add>, %48, %cst_23 [0] : vector<2x8x128xf32> to vector<8x128xf32>
    %50 = arith.addf %47, %49 : vector<8x128xf32>
    %c2_24 = arith.constant 2 : index
    %c0_25 = arith.constant 0 : index
    %c0_26 = arith.constant 0 : index
    %51 = vector.load %arg5[%c2_24, %c0_25, %c0_26] : memref<3x8x128xf32, #tpu.memory_space<vmem>>, vector<1x8x128xf32>
    %52 = vector.shape_cast %51 : vector<1x8x128xf32> to vector<8x128xf32>
    %53 = vector.shape_cast %50 : vector<8x128xf32> to vector<1x8x128xf32>
    tpu.vector_store %arg5[%c2_24, %c0_25, %c0_26], %53 {strides = array<i32>} : memref<3x8x128xf32, #tpu.memory_space<vmem>>, vector<1x8x128xf32>,
    %c0_i32_27 = arith.constant 0 : i32
    %54 = arith.cmpi eq, %arg1, %c0_i32_27 : i32
    %55 = arith.extui %54 : i1 to i32
    %c0_i32_28 = arith.constant 0 : i32
    %56 = arith.cmpi ne, %55, %c0_i32_28 : i32
    scf.if %56 {
      %c0_29 = arith.constant 0 : index
      %c0_30 = arith.constant 0 : index
      %c0_31 = arith.constant 0 : index
      %57 = vector.load %arg5[%c0_29, %c0_30, %c0_31] : memref<3x8x128xf32, #tpu.memory_space<vmem>>, vector<3x8x128xf32>
      %cst_32 = arith.constant dense<0.000000e+00> : vector<3x128xf32>
      %58 = vector.multi_reduction <add>, %57, %cst_32 [1] : vector<3x8x128xf32> to vector<3x128xf32>
      %59 = vector.shape_cast %58 : vector<3x128xf32> to vector<1x3x128xf32>
      %c0_33 = arith.constant 0 : index
      %c0_34 = arith.constant 0 : index
      %c0_35 = arith.constant 0 : index
      %60 = vector.load %arg4[%c0_33, %c0_34, %c0_35] : memref<1x3x128xf32, #tpu.memory_space<vmem>>, vector<1x3x128xf32>
      tpu.vector_store %arg4[%c0_33, %c0_34, %c0_35], %59 {strides = array<i32>} : memref<1x3x128xf32, #tpu.memory_space<vmem>>, vector<1x3x128xf32>,
    } else {
    }
    return
  }
  func.func @transform_0(%arg0: i32, %arg1: i32) -> (i32, i32) {
    %c1_i32 = arith.constant 1 : i32
    %0 = arith.muli %arg0, %c1_i32 : i32
    %1 = arith.addi %0, %arg1 : i32
    %c0_i32 = arith.constant 0 : i32
    %c0_i32_0 = arith.constant 0 : i32
    return %1, %c0_i32 : i32, i32
  }
  func.func @transform_1(%arg0: i32, %arg1: i32) -> (i32, i32) {
    %c1_i32 = arith.constant 1 : i32
    %0 = arith.muli %arg0, %c1_i32 : i32
    %1 = arith.addi %0, %arg1 : i32
    %c0_i32 = arith.constant 0 : i32
    %c0_i32_0 = arith.constant 0 : i32
    return %1, %c0_i32 : i32, i32
  }
  func.func @transform_2(%arg0: i32, %arg1: i32) -> (i32, i32, i32) {
    %c0_i32 = arith.constant 0 : i32
    %c0_i32_0 = arith.constant 0 : i32
    %c0_i32_1 = arith.constant 0 : i32
    return %arg0, %c0_i32, %c0_i32_0 : i32, i32, i32
  }
}

</mosaic_0001>

<bundles_post_ra>
// kernel: tpu_custom_call.1
= control target key start
LH: loop header
LB: loop body
LE: loop exit
PB: predicated region body
PF: predicated region fallthrough
CT: control target
= control target key end

     0   :  { %7 = vsyncpa [#allocation4], 0  ;;  %s269_s0 = inlined_call_operand.hbm [shape: f32[16,128], index: 0, kind: input, shape index: {}]   ;;  %s270_s1 = inlined_call_operand.hbm [shape: f32[16,128], index: 1, kind: input, shape index: {}]   ;;  %s271_s2 = inlined_call_operand.vmem [shape: f32[1,3,128], index: 2, kind: output, shape index: {}]  }
   0x1   :  { %8 = vsyncpa [#allocation6], 0  ;;  %s222_s9 = smov [#allocation3]   ;;  %s174_s13 = scalar_lea.hbm %s269_s0, 256 }
   0x2   :  { %s18_s10 = sshll.u32 %s222_s9, 4  ;;  %p175_p0 = scmp.ne.s32.totalorder %s269_s0, %s174_s13  ;;  %s19_s10 = int_to_ptr.vmem [resolvable:$true] %s18_s10 }
   0x3   :  { %p178_p1 = scmp.lt.u32.totalorder %s174_s13, %s269_s0 }
   0x5   :  { %p180_p2 = pnand %p178_p1, %p175_p0 }
   0x7   :  { %183 = shalt.err (!%p180_p2)
}
   0x8   :  { %s184_s18 = scalar_lea.vmem %s19_s10, 256  ;;  %p189_p4 = scmp.lt.s32.totalorder %s19_s10, %s19_s10 }
   0x9   :  { %p185_p3 = scmp.ne.s32.totalorder %s19_s10, %s184_s18  ;;  %p190_p5 = scmp.lt.s32.totalorder %s184_s18, %s184_s18 }
   0xb   :  { %p191_p6 = por %p190_p5, %p189_p4 }
   0xd   :  { %p192_p7 = pnand %p191_p6, %p185_p3 }
   0xf   :  { %195 = shalt.err (!%p192_p7)
}
  0x10   :  { %s223_s19 = smov 128   ;;  %s224_s20 = smov 8  }
  0x11   :  { %24 = dma.hbm_to_vmem [thread:$0]  %s269_s0, 256, %s19_s10, [#allocation4], %s223_s19, %s223_s19, %s224_s20  }
  0x12   :  { %s225_s23 = smov [#allocation5]   ;;  %s196_s27 = scalar_lea.hbm %s270_s1, 256 }
  0x13   :  { %s34_s24 = sshll.u32 %s225_s23, 4  ;;  %p197_p8 = scmp.ne.s32.totalorder %s270_s1, %s196_s27  ;;  %s35_s24 = int_to_ptr.vmem [resolvable:$true] %s34_s24 }
  0x14   :  { %p200_p9 = scmp.lt.u32.totalorder %s196_s27, %s270_s1 }
  0x16   :  { %p202_p10 = pnand %p200_p9, %p197_p8 }
  0x18   :  { %205 = shalt.err (!%p202_p10)
}
  0x19   :  { %s206_s4 = scalar_lea.vmem %s35_s24, 256  ;;  %p211_p12 = scmp.lt.s32.totalorder %s35_s24, %s35_s24 }
  0x1a   :  { %p207_p11 = scmp.ne.s32.totalorder %s35_s24, %s206_s4  ;;  %p212_p13 = scmp.lt.s32.totalorder %s206_s4, %s206_s4 }
  0x1c   :  { %p213_p0 = por %p212_p13, %p211_p12 }
  0x1e   :  { %p214_p1 = pnand %p213_p0, %p207_p11 }
  0x20   :  { %217 = shalt.err (!%p214_p1)
}
  0x21   :  { %40 = dma.hbm_to_vmem [thread:$0]  %s270_s1, 256, %s35_s24, [#allocation6], %s223_s19, %s223_s19, %s224_s20  }
  0x22   :  { %218 = dma.done.wait [#allocation4], 256  }
  0x23   :  { %219 = vsyncadd [#allocation4], 4294967040 }
  0x24   :  { %220 = dma.done.wait [#allocation6], 256  }
  0x25   :  { %221 = vsyncadd [#allocation6], 4294967040  ;;  %v58_v0 = vld [vmem:[#allocation3] sm:$0xff]  ;;  %v59_v1 = vld [vmem:[#allocation3 + $0x8] sm:$0xff]  ;;  %v226_v9 = vmov 0.0   ;;  %vm145_vm4 = vcmask 1041409  }
  0x26   :  { %166 = vlog2.f32 %v58_v0  ;;  %v60_v2 = vld [vmem:[#allocation5] sm:$0xff]  ;;  %v61_v3 = vld [vmem:[#allocation5 + $0x8] sm:$0xff]  ;;  %v84_v4 = vsub.f32 1.0, %v58_v0  ;;  %v85_v5 = vsub.f32 1.0, %v59_v1  ;;  %v96_v25 = vmul.f32 %v58_v0, %v58_v0 }
  0x27   :  { %168 = vlog2.f32 %v59_v1  ;;  %v74_v6 = vsub.f32 1.0, %v60_v2  ;;  %v75_v7 = vsub.f32 1.0, %v61_v3  ;;  %vm62_vm0 = vcmp.eq.f32.partialorder %v60_v2, 1.0 }
  0x28   :  { %170 = vlog2.f32 %v84_v4  ;;  %vm63_vm1 = vcmp.eq.f32.partialorder %v61_v3, 1.0  ;;  %v157_v10 = vsel %vm62_vm0, 1.0, %v226_v9  ;;  %v86_v13 = vmul.f32 %v84_v4, %v84_v4 }
  0x29   :  { %172 = vlog2.f32 %v85_v5  ;;  %v76_v8 = vmul.f32 %v74_v6, %v74_v6  ;;  %v158_v11 = vsel %vm63_vm1, 1.0, %v226_v9  ;;  %v77_v12 = vmul.f32 %v75_v7, %v75_v7 }
  0x2a   :  { %vm68_vm2 = vcmp.lt.f32.partialorder %v60_v2, 1.0  ;;  %v115_v15 = vadd.f32 %v158_v11, %v157_v10  ;;  %vm69_vm3 = vcmp.lt.f32.partialorder %v61_v3, 1.0  ;;  %v87_v18 = vmul.f32 %v85_v5, %v85_v5 }
  0x2b   :  { %v78_v17 = vmul.f32 %v76_v8, %v76_v8  ;;  %v159_v20 = vsel %vm68_vm2, 1.0, %v226_v9  ;;  %v79_v21 = vmul.f32 %v77_v12, %v77_v12  ;;  %v160_v23 = vsel %vm69_vm3, 1.0, %v226_v9 }
  0x2c   :  { %v136_v26 = vrot.slane %v115_v15, 4  ;;  %v97_v28 = vmul.f32 %v59_v1, %v59_v1  ;;  %vm147_vm5 = vcmask 1042434  }
  0x2d   :  { %v100_v33 = vmul.f32 %v159_v20, %v78_v17  ;;  %v101_v35 = vmul.f32 %v160_v23, %v79_v21 }
  0x2e   :  { %v137_v38 = vadd.f32 %v136_v26, %v115_v15 }
  0x30   :  { %v167_v14 = vpop.eup %166  ;;  %v138_v44 = vrot.slane %v137_v38, 2 }
  0x31   :  { %v81_v16 = vmul.f32 0.6931472, %v167_v14  ;;  %v169_v19 = vpop.eup %168 }
  0x32   :  { %v83_v24 = vmul.f32 0.6931472, %v169_v19  ;;  %v171_v27 = vpop.eup %170  ;;  %v139_v49 = vadd.f32 %v138_v44, %v137_v38 }
  0x33   :  { %v88_v22 = vmul.f32 %v86_v13, %v81_v16  ;;  %v173_v29 = vpop.eup %172  ;;  %v93_v32 = vmul.f32 0.6931472, %v171_v27 }
  0x34   :  { %v89_v30 = vmul.f32 %v87_v18, %v83_v24  ;;  %v95_v34 = vmul.f32 0.6931472, %v173_v29  ;;  %v140_v54 = vrot.slane %v139_v49, 1 }
  0x35   :  { %v90_v31 = vmul.f32 %v157_v10, %v88_v22  ;;  %v98_v37 = vmul.f32 %v96_v25, %v93_v32 }
  0x36   :  { %v91_v36 = vmul.f32 %v158_v11, %v89_v30  ;;  %v99_v39 = vmul.f32 %v97_v28, %v95_v34  ;;  %v141_v58 = vadd.f32 %v140_v54, %v139_v49 }
  0x37   :  { %v102_v40 = vmul.f32 %v100_v33, %v98_v37 }
  0x38   :  { %v105_v41 = vadd.f32 %v91_v36, %v90_v31  ;;  %v103_v42 = vmul.f32 %v101_v35, %v99_v39 }
  0x3a   :  { %v124_v43 = vrot.slane %v105_v41, 4  ;;  %v110_v45 = vadd.f32 %v103_v42, %v102_v40 }
  0x3c   :  { %v125_v46 = vadd.f32 %v124_v43, %v105_v41  ;;  %v130_v47 = vrot.slane %v110_v45, 4 }
  0x3e   :  { %v126_v48 = vrot.slane %v125_v46, 2  ;;  %v131_v50 = vadd.f32 %v130_v47, %v110_v45 }
  0x40   :  { %v127_v51 = vadd.f32 %v126_v48, %v125_v46  ;;  %v132_v52 = vrot.slane %v131_v50, 2 }
  0x42   :  { %v128_v53 = vrot.slane %v127_v51, 1  ;;  %v133_v55 = vadd.f32 %v132_v52, %v131_v50 }
  0x44   :  { %v129_v56 = vadd.f32 %v128_v53, %v127_v51  ;;  %v134_v57 = vrot.slane %v133_v55, 1 }
  0x46   :  { %v135_v59 = vadd.f32 %v134_v57, %v133_v55 }
  0x48   :  { %v146_v60 = vsel %vm145_vm4, %v135_v59, %v129_v56 }
  0x49   :  { %v148_v61 = vsel %vm147_vm5, %v141_v58, %v146_v60 }
  0x4a   :  { %150 = vst [vmem:[%s271_s2] sm:$0x7] %v148_v61 }
  0x4b   :  { %155 = vsyncpa [#allocation4], 1 }
  0x4c   :  { %156 = vsyncpa [#allocation6], 1 }

</bundles_post_ra>
